<compile_context>
chip_gen: v6e
topology: v6e:2x2x1
jax: 0.10.0
libtpu: 0.0.40
codegen_flags: <defaults>
</compile_context>

<pallas_src>
import functools

import jax
import jax.numpy as jnp
import numpy as np
from jax.experimental import pallas as pl
from jax.experimental.pallas import tpu as pltpu

_MAX_DMA_CHUNKS = 8  # outstanding HBM->HBM DMA descriptors for identity_copy


# -----------------------------------------------------------------------------
# Hot path: zero work, zero dispatch, zero fusion barrier.
# -----------------------------------------------------------------------------
def identity_map(x: jax.Array, *args, **kwargs) -> jax.Array:
    """Pallas-project equivalent of IdentityMap.forward: just return x."""
    del args, kwargs  # match the PyTorch signature: extra args are ignored
    return x


def identity_map_config():
    # Mirrors the PyTorch `config` property (no parameters to initialize).
    return {"mm_projector_type": "identity"}


# -----------------------------------------------------------------------------
# Opt-in Pallas path: output aliases the (donated) input; kernel body is a
# no-op, both operands stay in HBM (memory_space=pl.ANY), zero data movement.
# -----------------------------------------------------------------------------
def _identity_alias_kernel(x_hbm_ref, o_hbm_ref):
    # Output aliases the input (input_output_aliases={0: 0}); the data is
    # already in the right buffer, so there is literally nothing to do.
    del x_hbm_ref, o_hbm_ref


def _identity_map_pallas_impl(x: jax.Array) -> jax.Array:
    return pl.pallas_call(
        _identity_alias_kernel,
        out_shape=jax.ShapeDtypeStruct(x.shape, x.dtype),
        # Leave both operands where they are: no automatic HBM<->VMEM DMAs.
        in_specs=[pl.BlockSpec(memory_space=pl.ANY)],
        out_specs=pl.BlockSpec(memory_space=pl.ANY),
        # Alias input 0 -> output 0 so no copy traffic is emitted.
        input_output_aliases={0: 0},
    )(x)


# donate_argnums=0 guarantees the alias is honored in place: without donation
# XLA would insert a hidden full HBM copy of x before the custom call.
# NOTE: callers must not reuse x after calling this (its buffer is donated).
identity_map_pallas = jax.jit(_identity_map_pallas_impl, donate_argnums=0)


# -----------------------------------------------------------------------------
# Materializing copy (only if a fresh, non-aliased buffer is required):
# chunked direct HBM->HBM DMAs — start all, then wait all — so per-descriptor
# issue latency overlaps and the kernel stays HBM-BW-bound. No VMEM staging.
# -----------------------------------------------------------------------------
def _chunked_copy_kernel(x_hbm_ref, o_hbm_ref, copy_sems, *, chunks):
    started = []
    for i, (start, size) in enumerate(chunks):  # static python unroll
        cp = pltpu.make_async_copy(
            x_hbm_ref.at[pl.ds(start, size)],
            o_hbm_ref.at[pl.ds(start, size)],
            copy_sems.at[i],
        )
        cp.start()
        started.append(cp)
    for cp in started:
        cp.wait()


def _whole_copy_kernel(x_hbm_ref, o_hbm_ref, copy_sems):
    cp = pltpu.make_async_copy(x_hbm_ref, o_hbm_ref, copy_sems.at[0])
    cp.start()
    cp.wait()


def identity_copy(x: jax.Array) -> jax.Array:
    """Identity that returns a *new* buffer via chunked HBM->HBM DMAs.

    Prefer plain XLA (e.g. `jnp.copy`) outside of Pallas compositions; this
    exists for cases where the copy must live inside a Pallas pipeline.
    """
    nbytes = int(np.prod(x.shape)) * np.dtype(x.dtype).itemsize
    cost = pl.CostEstimate(flops=0, transcendentals=0, bytes_accessed=2 * nbytes)

    if x.ndim == 0 or x.shape[0] <= 1:
        kernel = _whole_copy_kernel
        n_chunks = 1
    else:
        dim0 = x.shape[0]
        n_chunks = min(_MAX_DMA_CHUNKS, dim0)
        base, rem = divmod(dim0, n_chunks)
        chunks, start = [], 0
        for i in range(n_chunks):
            size = base + (1 if i < rem else 0)
            chunks.append((start, size))
            start += size
        kernel = functools.partial(_chunked_copy_kernel, chunks=tuple(chunks))

    return pl.pallas_call(
        kernel,
        out_shape=jax.ShapeDtypeStruct(x.shape, x.dtype),
        in_specs=[pl.BlockSpec(memory_space=pl.ANY)],
        out_specs=pl.BlockSpec(memory_space=pl.ANY),
        scratch_shapes=[pltpu.SemaphoreType.DMA((n_chunks,))],
        cost_estimate=cost,
    )(x)


if __name__ == "__main__":
    key = jax.random.PRNGKey(0)
    # Small LLaVA-projector-like shape: batch=2, seq=8 vision tokens, hidden=128.
    x = jax.random.normal(key, (2, 8, 128), dtype=jnp.float32)

    # Host snapshot taken up-front so checks remain valid even after the
    # donated/aliased Pallas call reuses x's device buffer.
    x_host = np.asarray(jax.device_get(x))

    # 1) Materializing chunked HBM->HBM DMA copy (no aliasing, no donation).
    z = identity_copy(x)
    jax.block_until_ready(z)
    assert z.shape == x_host.shape and z.dtype == x_host.dtype
    assert np.array_equal(np.asarray(jax.device_get(z)), x_host)

    # 2) Hot path: plain `return x` (recommended; zero overhead).
    y = identity_map(x)
    jax.block_until_ready(y)
    assert y.shape == x_host.shape and y.dtype == x_host.dtype
    assert np.array_equal(np.asarray(jax.device_get(y)), x_host)

    # 3) Opt-in zero-copy aliased Pallas path. Donates x's buffer, so it runs
    #    last and x is not used afterwards.
    w = identity_map_pallas(x)
    jax.block_until_ready(w)
    assert w.shape == x_host.shape and w.dtype == x_host.dtype
    assert np.array_equal(np.asarray(jax.device_get(w)), x_host)

    assert identity_map_config() == {"mm_projector_type": "identity"}
    print("KERNEL_OK")
</pallas_src>

<mosaic_0001>
module attributes {stable_mosaic.version = 11 : i64} {
  func.func @_chunked_copy_kernel(%arg0: memref<2x8x128xf32, #tpu.memory_space<any>>, %arg1: memref<2x8x128xf32, #tpu.memory_space<any>>, %arg2: memref<2x!tpu.dma_semaphore, #tpu.memory_space<semaphore_mem>>) attributes {dimension_semantics = [], scalar_prefetch = 0 : i64, scratch_operands = 1 : i64, tpu.core_type = #tpu.core_type<tc>} {
    %c0_i32 = arith.constant 0 : i32
    %c0_i32_0 = arith.constant 0 : i32
    %c0_i32_1 = arith.constant 0 : i32
    %c0_i32_2 = arith.constant 0 : i32
    %0 = tpu.memref_slice %arg0[%c0_i32_0, %c0_i32_1, %c0_i32_2] : memref<2x8x128xf32, #tpu.memory_space<any>> -> memref<1x8x128xf32, #tpu.memory_space<any>>
    %c0_i32_3 = arith.constant 0 : i32
    %c0_i32_4 = arith.constant 0 : i32
    %c0_i32_5 = arith.constant 0 : i32
    %1 = tpu.memref_slice %arg1[%c0_i32_3, %c0_i32_4, %c0_i32_5] : memref<2x8x128xf32, #tpu.memory_space<any>> -> memref<1x8x128xf32, #tpu.memory_space<any>>
    %2 = tpu.memref_slice %arg2[%c0_i32] : memref<2x!tpu.dma_semaphore, #tpu.memory_space<semaphore_mem>> -> memref<1x!tpu.dma_semaphore, #tpu.memory_space<semaphore_mem>>
    %3 = tpu.memref_squeeze %2 : memref<1x!tpu.dma_semaphore, #tpu.memory_space<semaphore_mem>> -> memref<!tpu.dma_semaphore, #tpu.memory_space<semaphore_mem>>
    tpu.enqueue_dma source(%0 : memref<1x8x128xf32, #tpu.memory_space<any>>) target(%1 : memref<1x8x128xf32, #tpu.memory_space<any>>) target_semaphore(%3 : memref<!tpu.dma_semaphore, #tpu.memory_space<semaphore_mem>>)
    %c1_i32 = arith.constant 1 : i32
    %c1_i32_6 = arith.constant 1 : i32
    %c0_i32_7 = arith.constant 0 : i32
    %c0_i32_8 = arith.constant 0 : i32
    %4 = tpu.memref_slice %arg0[%c1_i32_6, %c0_i32_7, %c0_i32_8] : memref<2x8x128xf32, #tpu.memory_space<any>> -> memref<1x8x128xf32, #tpu.memory_space<any>>
    %c1_i32_9 = arith.constant 1 : i32
    %c0_i32_10 = arith.constant 0 : i32
    %c0_i32_11 = arith.constant 0 : i32
    %5 = tpu.memref_slice %arg1[%c1_i32_9, %c0_i32_10, %c0_i32_11] : memref<2x8x128xf32, #tpu.memory_space<any>> -> memref<1x8x128xf32, #tpu.memory_space<any>>
    %6 = tpu.memref_slice %arg2[%c1_i32] : memref<2x!tpu.dma_semaphore, #tpu.memory_space<semaphore_mem>> -> memref<1x!tpu.dma_semaphore, #tpu.memory_space<semaphore_mem>>
    %7 = tpu.memref_squeeze %6 : memref<1x!tpu.dma_semaphore, #tpu.memory_space<semaphore_mem>> -> memref<!tpu.dma_semaphore, #tpu.memory_space<semaphore_mem>>
    tpu.enqueue_dma source(%4 : memref<1x8x128xf32, #tpu.memory_space<any>>) target(%5 : memref<1x8x128xf32, #tpu.memory_space<any>>) target_semaphore(%7 : memref<!tpu.dma_semaphore, #tpu.memory_space<semaphore_mem>>)
    %c0_i32_12 = arith.constant 0 : i32
    %c0_i32_13 = arith.constant 0 : i32
    %c0_i32_14 = arith.constant 0 : i32
    %c0_i32_15 = arith.constant 0 : i32
    %8 = tpu.memref_slice %arg0[%c0_i32_13, %c0_i32_14, %c0_i32_15] : memref<2x8x128xf32, #tpu.memory_space<any>> -> memref<1x8x128xf32, #tpu.memory_space<any>>
    %c0_i32_16 = arith.constant 0 : i32
    %c0_i32_17 = arith.constant 0 : i32
    %c0_i32_18 = arith.constant 0 : i32
    %9 = tpu.memref_slice %arg1[%c0_i32_16, %c0_i32_17, %c0_i32_18] : memref<2x8x128xf32, #tpu.memory_space<any>> -> memref<1x8x128xf32, #tpu.memory_space<any>>
    %10 = tpu.memref_slice %arg2[%c0_i32_12] : memref<2x!tpu.dma_semaphore, #tpu.memory_space<semaphore_mem>> -> memref<1x!tpu.dma_semaphore, #tpu.memory_space<semaphore_mem>>
    %11 = tpu.memref_squeeze %10 : memref<1x!tpu.dma_semaphore, #tpu.memory_space<semaphore_mem>> -> memref<!tpu.dma_semaphore, #tpu.memory_space<semaphore_mem>>
    tpu.wait_dma2 semaphore(%11 : memref<!tpu.dma_semaphore, #tpu.memory_space<semaphore_mem>>) src(%8 : memref<1x8x128xf32, #tpu.memory_space<any>>) dst(%9 : memref<1x8x128xf32, #tpu.memory_space<any>>)
    %c1_i32_19 = arith.constant 1 : i32
    %c1_i32_20 = arith.constant 1 : i32
    %c0_i32_21 = arith.constant 0 : i32
    %c0_i32_22 = arith.constant 0 : i32
    %12 = tpu.memref_slice %arg0[%c1_i32_20, %c0_i32_21, %c0_i32_22] : memref<2x8x128xf32, #tpu.memory_space<any>> -> memref<1x8x128xf32, #tpu.memory_space<any>>
    %c1_i32_23 = arith.constant 1 : i32
    %c0_i32_24 = arith.constant 0 : i32
    %c0_i32_25 = arith.constant 0 : i32
    %13 = tpu.memref_slice %arg1[%c1_i32_23, %c0_i32_24, %c0_i32_25] : memref<2x8x128xf32, #tpu.memory_space<any>> -> memref<1x8x128xf32, #tpu.memory_space<any>>
    %14 = tpu.memref_slice %arg2[%c1_i32_19] : memref<2x!tpu.dma_semaphore, #tpu.memory_space<semaphore_mem>> -> memref<1x!tpu.dma_semaphore, #tpu.memory_space<semaphore_mem>>
    %15 = tpu.memref_squeeze %14 : memref<1x!tpu.dma_semaphore, #tpu.memory_space<semaphore_mem>> -> memref<!tpu.dma_semaphore, #tpu.memory_space<semaphore_mem>>
    tpu.wait_dma2 semaphore(%15 : memref<!tpu.dma_semaphore, #tpu.memory_space<semaphore_mem>>) src(%12 : memref<1x8x128xf32, #tpu.memory_space<any>>) dst(%13 : memref<1x8x128xf32, #tpu.memory_space<any>>)
    return
  }
}

</mosaic_0001>

<bundles_post_ra>
// kernel: tpu_custom_call.1
= control target key start
LH: loop header
LB: loop body
LE: loop exit
PB: predicated region body
PF: predicated region fallthrough
CT: control target
= control target key end

     0   :  { %s52_s9 = smov [#allocation2]   ;;  %s53_s10 = smov 131072   ;;  %s78_s0 = inlined_call_operand.hbm [shape: f32[2,8,128], index: 0, kind: input, shape index: {}]   ;;  %s79_s1 = inlined_call_operand.hbm [shape: f32[2,8,128], index: 1, kind: output, shape index: {}]  }
   0x1   :  { %s13_s8 = scalar_lea.hbm %s78_s0, 128  ;;  %s54_s11 = smov 0  }
   0x2   :  { %12 = dma.general %s78_s0, 128, %s79_s1, %s52_s9, %s53_s10, [#allocation4], %s54_s11, 0  }
   0x3   :  { %s14_s18 = scalar_lea.hbm %s79_s1, 128  ;;  %s55_s19 = smov [#allocation2 + $0x1]  }
   0x4   :  { %22 = dma.general %s13_s8, 128, %s14_s18, %s55_s19, %s53_s10, [#allocation6], %s54_s11, 0  }
   0x5   :  { %48 = dma.done.wait [#allocation2], 128 }
   0x6   :  { %49 = vsyncadd [#allocation2], 4294967168 }
   0x7   :  { %50 = dma.done.wait [#allocation2 + $0x1], 128 }
   0x8   :  { %51 = vsyncadd [#allocation2 + $0x1], 4294967168 }
   0x9   :  { %29 = vsyncmov [#allocation2] }
   0xc   :  { %s30_s20 = vpop.sfrf %29 }
   0xd   :  { %p42_p0 = scmp.ne.s32.totalorder %s30_s20, 0 }
   0xf   :  { %34 = shalt.err (%p42_p0)  }
  0x10   :  { %36 = vsyncmov [#allocation2 + $0x1] }
  0x13   :  { %s37_s21 = vpop.sfrf %36 }
  0x14   :  { %p43_p1 = scmp.ne.s32.totalorder %s37_s21, 0 }
  0x16   :  { %41 = shalt.err (%p43_p1)  }

</bundles_post_ra>
